<compile_context>
chip_gen: v6e
topology: v6e:2x2x1
jax: 0.10.0
libtpu: 0.0.40
codegen_flags: <defaults>
</compile_context>

<pallas_src>
import functools

import jax
import jax.numpy as jnp
from jax.experimental import pallas as pl
from jax.experimental.pallas import tpu as pltpu


_LANE = 128


def _round_up(x, m):
    return ((x + m - 1) // m) * m


def _pick_tile(n_pad, cap):
    """Largest multiple-of-128 tile <= cap that divides n_pad (n_pad is a 128-multiple)."""
    t = min(cap, n_pad)
    while t > _LANE and n_pad % t != 0:
        t -= _LANE
    return t


def _vmem_budget():
    """Per-generation scoped-VMEM budget (bytes)."""
    try:
        phys = pltpu.get_tpu_info().vmem_capacity_bytes
    except Exception:
        phys = 64 * 1024 * 1024
    if phys >= 128 * 1024 * 1024:          # v5e / v6e: 128 MiB physical
        return 100 * 1024 * 1024
    return max(32 * 1024 * 1024, phys - 16 * 1024 * 1024)   # v7x: 64 MiB -> 48 MiB


# --------------- fused kernel: all layers, A_hat resident in VMEM ---------------

def _fused_kernel(x_ref, a_ref, w_ref, b_ref, o_ref, h_ref, *, num_layers):
    l = pl.program_id(0)

    @pl.when(l == 0)
    def _():
        h_ref[...] = x_ref[...]                      # H_0 = X (bf16)

    # XW in f32, cast to bf16 for the MXU aggregation.
    xw = jnp.dot(h_ref[...], w_ref[0], preferred_element_type=jnp.float32)
    agg = jnp.dot(a_ref[...], xw.astype(jnp.bfloat16),
                  preferred_element_type=jnp.float32) + b_ref[0]

    @pl.when(l < num_layers - 1)
    def _():
        h_ref[...] = jnp.maximum(agg, 0.0).astype(h_ref.dtype)

    @pl.when(l == num_layers - 1)
    def _():
        o_ref[...] = agg


def _fused_forward(x, a_bf16, params, n_pad, f_max, vmem_limit):
    n, f_in = x.shape
    num_layers = len(params)

    x_pad = jnp.pad(x.astype(jnp.bfloat16), ((0, n_pad - n), (0, f_max - f_in)))
    w_stack, b_stack = [], []
    for w, b in params:
        fi, fo = w.shape
        w_stack.append(jnp.pad(w.astype(jnp.bfloat16),
                               ((0, f_max - fi), (0, f_max - fo))))
        b_stack.append(jnp.pad(b.astype(jnp.float32), (0, f_max - fo)))
    w_stack = jnp.stack(w_stack)                     # (L, f_max, f_max) bf16
    b_stack = jnp.stack(b_stack)[:, None, :]         # (L, 1, f_max) f32

    out = pl.pallas_call(
        functools.partial(_fused_kernel, num_layers=num_layers),
        out_shape=jax.ShapeDtypeStruct((n_pad, f_max), jnp.float32),
        grid=(num_layers,),
        in_specs=[
            pl.BlockSpec((n_pad, f_max), lambda l: (0, 0)),         # X: DMA'd once
            pl.BlockSpec((n_pad, n_pad), lambda l: (0, 0)),         # A_hat: DMA'd once
            pl.BlockSpec((1, f_max, f_max), lambda l: (l, 0, 0)),   # W_l
            pl.BlockSpec((1, 1, f_max), lambda l: (l, 0, 0)),       # b_l
        ],
        out_specs=pl.BlockSpec((n_pad, f_max), lambda l: (0, 0)),
        scratch_shapes=[pltpu.VMEM((n_pad, f_max), jnp.bfloat16)],  # resident H
        compiler_params=pltpu.CompilerParams(
            dimension_semantics=("arbitrary",),
            vmem_limit_bytes=vmem_limit,
        ),
    )(x_pad, a_bf16, w_stack, b_stack)

    f_out = params[-1][0].shape[1]
    return out[:n, :f_out]


# ------------------- kernel 1: feature transform  H = X @ W ---------------------

def _xw_kernel(x_ref, w_ref, h_ref):
    h_ref[...] = jnp.dot(
        x_ref[...], w_ref[...], preferred_element_type=jnp.float32
    ).astype(h_ref.dtype)


def _transform(x_bf16, w_bf16, *, tm, vmem_limit):
    n_pad, f_in_pad = x_bf16.shape
    f_out_pad = w_bf16.shape[1]
    # TODO(synk): for extremely wide f_in (W tile approaching the VMEM budget on
    # v7x) add a K-tiled grid with an f32 accumulator like _agg_kernel.
    return pl.pallas_call(
        _xw_kernel,
        out_shape=jax.ShapeDtypeStruct((n_pad, f_out_pad), jnp.bfloat16),
        grid=(n_pad // tm,),
        in_specs=[
            pl.BlockSpec((tm, f_in_pad), lambda i: (i, 0)),          # X row tile
            pl.BlockSpec((f_in_pad, f_out_pad), lambda i: (0, 0)),   # full W
        ],
        out_specs=pl.BlockSpec((tm, f_out_pad), lambda i: (i, 0)),
        compiler_params=pltpu.CompilerParams(
            dimension_semantics=("parallel",),
            vmem_limit_bytes=vmem_limit,
        ),
    )(x_bf16, w_bf16)


# ------------- kernel 2: aggregation  OUT = A_hat @ H + b (+ ReLU) --------------

def _agg_kernel(a_ref, h_ref, b_ref, o_ref, acc_ref, *, apply_relu, h_resident, tk):
    k = pl.program_id(1)

    @pl.when(k == 0)
    def _():
        acc_ref[...] = jnp.zeros_like(acc_ref)

    if h_resident:
        # H fully resident in VMEM; slice the k-th reduction block.
        h_blk = h_ref[pl.ds(pl.multiple_of(k * tk, tk), tk), :]
    else:
        h_blk = h_ref[...]
    acc_ref[...] += jnp.dot(a_ref[...], h_blk, preferred_element_type=jnp.float32)

    @pl.when(k == pl.num_programs(1) - 1)
    def _():
        out = acc_ref[...] + b_ref[...]           # bias only at finalize
        if apply_relu:
            out = jnp.maximum(out, 0.0)
        o_ref[...] = out.astype(o_ref.dtype)


def _aggregate(a_bf16, h_bf16, b_pad, *, apply_relu, tm, tk, out_dtype, vmem_limit):
    n_pad = a_bf16.shape[0]
    f_out_pad = h_bf16.shape[1]

    # Decide whether H fits fully resident in VMEM (double-buffered bf16) next to
    # the per-step A tiles, output block and accumulator.
    out_bytes = jnp.dtype(out_dtype).itemsize
    step_bytes = (2 * tm * tk * 2                 # A tiles (double-buffered bf16)
                  + 2 * tm * f_out_pad * out_bytes
                  + tm * f_out_pad * 4)           # f32 accumulator scratch
    h_resident = (2 * n_pad * f_out_pad * 2 + step_bytes) <= int(0.7 * vmem_limit)

    if h_resident:
        h_spec = pl.BlockSpec((n_pad, f_out_pad), lambda i, k: (0, 0))
    else:
        h_spec = pl.BlockSpec((tk, f_out_pad), lambda i, k: (k, 0))

    kernel = functools.partial(_agg_kernel, apply_relu=apply_relu,
                               h_resident=h_resident, tk=tk)
    return pl.pallas_call(
        kernel,
        out_shape=jax.ShapeDtypeStruct((n_pad, f_out_pad), out_dtype),
        grid=(n_pad // tm, n_pad // tk),
        in_specs=[
            pl.BlockSpec((tm, tk), lambda i, k: (i, k)),            # A_hat tile
            h_spec,                                                  # H (resident or tiled)
            pl.BlockSpec((1, f_out_pad), lambda i, k: (0, 0)),      # bias
        ],
        out_specs=pl.BlockSpec((tm, f_out_pad), lambda i, k: (i, 0)),
        scratch_shapes=[pltpu.VMEM((tm, f_out_pad), jnp.float32)],
        compiler_params=pltpu.CompilerParams(
            dimension_semantics=("parallel", "arbitrary"),
            vmem_limit_bytes=vmem_limit,
        ),
    )(a_bf16, h_bf16, b_pad)


# ----------------------------------- JAX glue -----------------------------------

def build_norm_adj(edge_index, num_nodes):
    """Dense GCN-normalized adjacency.

    Matches PyG gcn_norm with add_remaining_self_loops: existing self-loop edges
    are dropped and exactly one weight-1 self loop is added per node; duplicate
    non-loop edges accumulate (same as PyG's sparse scatter-add).
    A_hat[i, j] = deg^{-1/2}[i] * deg^{-1/2}[j] for edge j->i.
    """
    row, col = edge_index[0], edge_index[1]          # row = source, col = target
    not_loop = (row != col).astype(jnp.float32)
    deg = jnp.zeros((num_nodes,), jnp.float32).at[col].add(not_loop) + 1.0
    dinv = jax.lax.rsqrt(deg)
    w = dinv[row] * dinv[col] * not_loop
    a = jnp.zeros((num_nodes, num_nodes), jnp.float32).at[col, row].add(w)
    return a + jnp.diag(dinv * dinv)                 # self-loop weight 1


def glorot(key, fan_in, fan_out):
    # PyG 'glorot' initializer: uniform(-a, a), a = sqrt(6 / (fan_in + fan_out))
    a = jnp.sqrt(6.0 / (fan_in + fan_out))
    return jax.random.uniform(key, (fan_in, fan_out), jnp.float32, -a, a)


def init_node_gcn_params(key, num_features, num_classes, hidden_channels, num_layers):
    dims = [num_features] + [hidden_channels] * (num_layers - 1) + [num_classes]
    params = []
    for i in range(num_layers):
        key, sub = jax.random.split(key)
        w = glorot(sub, dims[i], dims[i + 1])
        b = jnp.zeros((dims[i + 1],), jnp.float32)   # GCNConv resets bias to zeros
        params.append((w, b))
    return params


def node_gcn_forward(x, edge_index, params, *, force_per_layer=False):
    n, f_in = x.shape
    n_pad = _round_up(max(n, _LANE), _LANE)
    budget = _vmem_budget()
    num_layers = len(params)

    dims_pad = [_round_up(f_in, _LANE)] + [_round_up(w.shape[1], _LANE)
                                           for w, _ in params]
    f_max = max(dims_pad)

    # Build A_hat in f32 at (n, n), cast to bf16, then pad (no full-size f32 copy).
    a_hat = build_norm_adj(edge_index, n)
    a_bf16 = jnp.pad(a_hat.astype(jnp.bfloat16), ((0, n_pad - n), (0, n_pad - n)))
    # TODO(synk): validate fp8 (v7x) / int8 (v5e/v6e) quantization of A_hat to
    # halve the dominant HBM stream on the per-layer path.

    # Fused path: A_hat + X + H resident in VMEM across all layers.
    fused_bytes = (
        2 * n_pad * n_pad * 2        # A_hat (double-buffered bf16)
        + 3 * n_pad * f_max * 2      # H scratch + resident X (double-buffered bf16)
        + 2 * f_max * f_max * 2      # W_l tile (double-buffered bf16)
        + 2 * n_pad * f_max * 4      # output block (double-buffered f32)
        + 4 * n_pad * f_max * 4      # headroom for XW / AGG f32 temporaries
    )
    if (not force_per_layer) and fused_bytes <= int(0.8 * budget):
        return _fused_forward(x, a_bf16, params, n_pad, f_max, budget)

    # -------------------- per-layer tiled path (large graphs) --------------------
    tm = _pick_tile(n_pad, cap=512)
    if n_pad // tm < 2 and n_pad >= 2 * _LANE:
        tm = n_pad // 2                    # >= 2 row blocks so both v7x TCs get work
    tk = _pick_tile(n_pad, cap=2048)       # big reduction tiles: DMA >> per-step overhead

    h = jnp.pad(x.astype(jnp.bfloat16), ((0, n_pad - n), (0, dims_pad[0] - f_in)))
    for i, (w, b) in enumerate(params):
        fi, fo = w.shape
        fi_pad, fo_pad = _round_up(fi, _LANE), _round_up(fo, _LANE)
        w_pad = jnp.pad(w.astype(jnp.bfloat16), ((0, fi_pad - fi), (0, fo_pad - fo)))
        b_pad = jnp.pad(b.astype(jnp.float32), (0, fo_pad - fo))[None, :]
        last = i == num_layers - 1

        xw = _transform(h, w_pad, tm=tm, vmem_limit=budget)
        h = _aggregate(a_bf16, xw, b_pad, apply_relu=not last, tm=tm, tk=tk,
                       out_dtype=jnp.float32 if last else jnp.bfloat16,
                       vmem_limit=budget)

    f_out = params[-1][0].shape[1]
    return h[:n, :f_out]


# Pure-JAX f32 reference for the sanity check.
def node_gcn_ref(x, edge_index, params):
    a_hat = build_norm_adj(edge_index, x.shape[0])
    n_layers = len(params)
    for i, (w, b) in enumerate(params):
        x = a_hat @ (x @ w) + b
        if i < n_layers - 1:
            x = jnp.maximum(x, 0.0)
    return x


# ------------------------------------- main -------------------------------------

if __name__ == "__main__":
    key = jax.random.PRNGKey(0)

    num_nodes = 16
    num_features = 8
    hidden_channels = 32
    num_classes = 4
    num_layers = 3
    num_edges = 40

    k_x, k_src, k_dst, k_p = jax.random.split(key, 4)
    x = jax.random.normal(k_x, (num_nodes, num_features), jnp.float32)
    src = jax.random.randint(k_src, (num_edges,), 0, num_nodes, jnp.int32)
    dst = jax.random.randint(k_dst, (num_edges,), 0, num_nodes, jnp.int32)
    edge_index = jnp.stack([src, dst], axis=0)        # [2, E]

    params = init_node_gcn_params(k_p, num_features, num_classes,
                                  hidden_channels, num_layers)

    ref = node_gcn_ref(x, edge_index, params)

    # Fused (resident A_hat) path — the one a graph of this size actually uses.
    fwd_fused = jax.jit(functools.partial(node_gcn_forward, force_per_layer=False))
    out = jax.block_until_ready(fwd_fused(x, edge_index, params))
    assert out.shape == (num_nodes, num_classes)
    # bf16 matmul operands (f32 accumulation) -> slightly looser tolerance.
    assert jnp.allclose(out, ref, atol=5e-2, rtol=5e-2), "fused path mismatch vs reference"

    # Per-layer tiled path (large-graph code path), exercised here at small size.
    fwd_tiled = jax.jit(functools.partial(node_gcn_forward, force_per_layer=True))
    out2 = jax.block_until_ready(fwd_tiled(x, edge_index, params))
    assert out2.shape == (num_nodes, num_classes)
    assert jnp.allclose(out2, ref, atol=5e-2, rtol=5e-2), "tiled path mismatch vs reference"

    print("KERNEL_OK")
</pallas_src>

<mosaic_0001>
module attributes {stable_mosaic.version = 11 : i64} {
  func.func private @main(%arg0: i32) attributes {dimension_semantics = [#tpu.dimension_semantics<core_parallel>], iteration_bounds = array<i64: 2>, tpu.core_type = #tpu.core_type<sc_scalar_subcore>, window_params = []} {
    return
  }
}

module attributes {stable_mosaic.version = 11 : i64} {
  func.func private @main(%arg0: i32) attributes {dimension_semantics = [#tpu.dimension_semantics<core_parallel>], iteration_bounds = array<i64: 2>, tpu.core_type = #tpu.core_type<sc_scalar_subcore>, window_params = []} {
    return
  }
}

module attributes {stable_mosaic.version = 11 : i64} {
  func.func @_fused_kernel(%arg0: i32, %arg1: memref<128x128xbf16, #tpu.memory_space<vmem>>, %arg2: memref<128x128xbf16, #tpu.memory_space<vmem>>, %arg3: memref<1x128x128xbf16, #tpu.memory_space<vmem>>, %arg4: memref<1x1x128xf32, #tpu.memory_space<vmem>>, %arg5: memref<128x128xf32, #tpu.memory_space<vmem>>, %arg6: memref<128x128xbf16, #tpu.memory_space<vmem>>) attributes {dimension_semantics = [#tpu.dimension_semantics<arbitrary>], iteration_bounds = array<i64: 3>, scalar_prefetch = 0 : i64, scratch_operands = 1 : i64, tpu.core_type = #tpu.core_type<tc>, window_params = [{pipeline_mode = #tpu.pipeline_mode<synchronous>, transform_indices = @transform_0, window_bounds = array<i64: 128, 128>}, {pipeline_mode = #tpu.pipeline_mode<synchronous>, transform_indices = @transform_1, window_bounds = array<i64: 128, 128>}, {transform_indices = @transform_2, window_bounds = array<i64: 1, 128, 128>}, {transform_indices = @transform_3, window_bounds = array<i64: 1, 1, 128>}, {pipeline_mode = #tpu.pipeline_mode<synchronous>, transform_indices = @transform_4, window_bounds = array<i64: 128, 128>}]} {
    %c0_i32 = arith.constant 0 : i32
    %0 = arith.cmpi eq, %arg0, %c0_i32 : i32
    %1 = arith.extui %0 : i1 to i32
    %c0_i32_0 = arith.constant 0 : i32
    %2 = arith.cmpi ne, %1, %c0_i32_0 : i32
    scf.if %2 {
      %c0_14 = arith.constant 0 : index
      %c0_15 = arith.constant 0 : index
      %20 = vector.load %arg1[%c0_14, %c0_15] : memref<128x128xbf16, #tpu.memory_space<vmem>>, vector<128x128xbf16>
      %c0_16 = arith.constant 0 : index
      %c0_17 = arith.constant 0 : index
      %21 = vector.load %arg6[%c0_16, %c0_17] : memref<128x128xbf16, #tpu.memory_space<vmem>>, vector<128x128xbf16>
      tpu.vector_store %arg6[%c0_16, %c0_17], %20 {strides = array<i32>} : memref<128x128xbf16, #tpu.memory_space<vmem>>, vector<128x128xbf16>,
    } else {
    }
    %c0 = arith.constant 0 : index
    %c0_1 = arith.constant 0 : index
    %3 = vector.load %arg6[%c0, %c0_1] : memref<128x128xbf16, #tpu.memory_space<vmem>>, vector<128x128xbf16>
    %c0_2 = arith.constant 0 : index
    %c0_3 = arith.constant 0 : index
    %c0_4 = arith.constant 0 : index
    %4 = vector.load %arg3[%c0_2, %c0_3, %c0_4] : memref<1x128x128xbf16, #tpu.memory_space<vmem>>, vector<1x128x128xbf16>
    %5 = vector.shape_cast %4 : vector<1x128x128xbf16> to vector<128x128xbf16>
    %cst = arith.constant dense<0.000000e+00> : vector<128x128xf32>
    %6 = tpu.matmul %3, %5, %cst {dimension_numbers = #tpu.dot_dimension_numbers<[1], [0], [0], [1], [0, 0, 1, 1], [], []>} : vector<128x128xbf16>, vector<128x128xbf16>, vector<128x128xf32> -> vector<128x128xf32>
    %c0_5 = arith.constant 0 : index
    %c0_6 = arith.constant 0 : index
    %7 = vector.load %arg2[%c0_5, %c0_6] : memref<128x128xbf16, #tpu.memory_space<vmem>>, vector<128x128xbf16>
    %8 = arith.truncf %6 : vector<128x128xf32> to vector<128x128xbf16>
    %cst_7 = arith.constant dense<0.000000e+00> : vector<128x128xf32>
    %9 = tpu.matmul %7, %8, %cst_7 {dimension_numbers = #tpu.dot_dimension_numbers<[1], [0], [0], [1], [0, 0, 1, 1], [], []>} : vector<128x128xbf16>, vector<128x128xbf16>, vector<128x128xf32> -> vector<128x128xf32>
    %c0_8 = arith.constant 0 : index
    %c0_9 = arith.constant 0 : index
    %c0_10 = arith.constant 0 : index
    %10 = vector.load %arg4[%c0_8, %c0_9, %c0_10] : memref<1x1x128xf32, #tpu.memory_space<vmem>>, vector<1x1x128xf32>
    %11 = vector.shape_cast %10 : vector<1x1x128xf32> to vector<1x128xf32>
    %12 = vector.broadcast %11 : vector<1x128xf32> to vector<128x128xf32>
    %13 = arith.addf %9, %12 : vector<128x128xf32>
    %c2_i32 = arith.constant 2 : i32
    %14 = arith.cmpi slt, %arg0, %c2_i32 : i32
    %15 = arith.extui %14 : i1 to i32
    %c0_i32_11 = arith.constant 0 : i32
    %16 = arith.cmpi ne, %15, %c0_i32_11 : i32
    scf.if %16 {
      %cst_14 = arith.constant 0.000000e+00 : f32
      %20 = vector.broadcast %cst_14 : f32 to vector<128x128xf32>
      %21 = arith.maximumf %13, %20 : vector<128x128xf32>
      %22 = arith.truncf %21 : vector<128x128xf32> to vector<128x128xbf16>
      %c0_15 = arith.constant 0 : index
      %c0_16 = arith.constant 0 : index
      %23 = vector.load %arg6[%c0_15, %c0_16] : memref<128x128xbf16, #tpu.memory_space<vmem>>, vector<128x128xbf16>
      tpu.vector_store %arg6[%c0_15, %c0_16], %22 {strides = array<i32>} : memref<128x128xbf16, #tpu.memory_space<vmem>>, vector<128x128xbf16>,
    } else {
    }
    %c2_i32_12 = arith.constant 2 : i32
    %17 = arith.cmpi eq, %arg0, %c2_i32_12 : i32
    %18 = arith.extui %17 : i1 to i32
    %c0_i32_13 = arith.constant 0 : i32
    %19 = arith.cmpi ne, %18, %c0_i32_13 : i32
    scf.if %19 {
      %c0_14 = arith.constant 0 : index
      %c0_15 = arith.constant 0 : index
      %20 = vector.load %arg5[%c0_14, %c0_15] : memref<128x128xf32, #tpu.memory_space<vmem>>, vector<128x128xf32>
      tpu.vector_store %arg5[%c0_14, %c0_15], %13 {strides = array<i32>} : memref<128x128xf32, #tpu.memory_space<vmem>>, vector<128x128xf32>,
    } else {
    }
    return
  }
  func.func @transform_0(%arg0: i32) -> (i32, i32) {
    %c0_i32 = arith.constant 0 : i32
    %c0_i32_0 = arith.constant 0 : i32
    %c0_i32_1 = arith.constant 0 : i32
    return %c0_i32, %c0_i32_0 : i32, i32
  }
  func.func @transform_1(%arg0: i32) -> (i32, i32) {
    %c0_i32 = arith.constant 0 : i32
    %c0_i32_0 = arith.constant 0 : i32
    %c0_i32_1 = arith.constant 0 : i32
    return %c0_i32, %c0_i32_0 : i32, i32
  }
  func.func @transform_2(%arg0: i32) -> (i32, i32, i32) {
    %c0_i32 = arith.constant 0 : i32
    %c0_i32_0 = arith.constant 0 : i32
    %c0_i32_1 = arith.constant 0 : i32
    return %arg0, %c0_i32, %c0_i32_0 : i32, i32, i32
  }
  func.func @transform_3(%arg0: i32) -> (i32, i32, i32) {
    %c0_i32 = arith.constant 0 : i32
    %c0_i32_0 = arith.constant 0 : i32
    %c0_i32_1 = arith.constant 0 : i32
    return %arg0, %c0_i32, %c0_i32_0 : i32, i32, i32
  }
  func.func @transform_4(%arg0: i32) -> (i32, i32) {
    %c0_i32 = arith.constant 0 : i32
    %c0_i32_0 = arith.constant 0 : i32
    %c0_i32_1 = arith.constant 0 : i32
    return %c0_i32, %c0_i32_0 : i32, i32
  }
}

</mosaic_0001>

<bundles_post_ra>
// kernel: node_gcn_forward.1
= control target key start
LH: loop header
LB: loop body
LE: loop exit
PB: predicated region body
PF: predicated region fallthrough
CT: control target
= control target key end

     0   :  { %s1069_s15 = smov 0   ;;  %s1224_s0 = inlined_call_operand.vmem [shape: bf16[128,128], index: 0, kind: input, shape index: {}]   ;;  %s1225_s1 = inlined_call_operand.vmem [shape: bf16[128,128], index: 1, kind: input, shape index: {}]   ;;  %s1226_s2 = inlined_call_operand.vmem [shape: bf16[3,128,128], index: 2, kind: input, shape index: {}]   ;;  %s1227_s3 = inlined_call_operand.vmem [shape: f32[3,1,128], index: 3, kind: input, shape index: {}]   ;;  %s1228_s4 = inlined_call_operand.vmem [shape: f32[128,128], index: 4, kind: output, shape index: {}]  }
   0x1 LB: > { %s1075_s16 = sadd.s32 4294967295, %s1042_s15   ;;  %p795_p0 = scmp.ge.s32.totalorder %s1042_s15, 1  ;;  %s1042_s15 = sphi %s1069_s15, %s14_s15  }
   0x2   : > { %p165_p1 = scmp.lt.s32.totalorder %s1042_s15, 4 }
   0x4   : > { %p166_p2 = pnand %p795_p0, %p165_p1 }
   0x5   : > { %p189_p3 = scmp.lt.s32.totalorder (!%p166_p2), %s1075_s16, 2  ;;  %p798_p4 = scmp.ne.s32.totalorder (!%p166_p2), %s1075_s16, 0 }
   0x6   : > { %169 = sbr.rel (%p166_p2) target bundleno = 559 (0x22f), region = 36 }
   0xb   : > { %s1081_s17 = scalar_select %p189_p3, %s1075_s16, 2 }
   0xc   : > { %201 = sbr.rel (%p798_p4) target bundleno = 22 (0x16), region = 40 }
   0xd   : > { %s844_s18 = sshll.u32 %s1081_s17, 6  ;;  %s196_s21 = scalar_lea.vmem %s1227_s3, %s1081_s17 }
   0xe   : > { %s1091_s24 = scalar_lea.vmem %s1226_s2, %s844_s18 }
  0x11   : > { %v202_v0 = vld [vmem:[%s1224_s0] sm:$0xff]   ;;  %v204_v1 = vld [vmem:[%s1224_s0 + $0x8] sm:$0xff]   ;;  %v206_v2 = vld [vmem:[%s1224_s0 + $0x10] sm:$0xff]  }
  0x12   : > { %218 = vst [vmem:[#allocation2] sm:$0xff] %v202_v0   ;;  %220 = vst [vmem:[#allocation2 + $0x8] sm:$0xff] %v204_v1   ;;  %v208_v3 = vld [vmem:[%s1224_s0 + $0x18] sm:$0xff]   ;;  %v210_v4 = vld [vmem:[%s1224_s0 + $0x20] sm:$0xff]  }
  0x13   : > { %222 = vst [vmem:[#allocation2 + $0x10] sm:$0xff] %v206_v2   ;;  %v212_v5 = vld [vmem:[%s1224_s0 + $0x28] sm:$0xff]   ;;  %224 = vst [vmem:[#allocation2 + $0x18] sm:$0xff] %v208_v3   ;;  %v214_v6 = vld [vmem:[%s1224_s0 + $0x30] sm:$0xff]  }
  0x14   : > { %226 = vst [vmem:[#allocation2 + $0x20] sm:$0xff] %v210_v4   ;;  %228 = vst [vmem:[#allocation2 + $0x28] sm:$0xff] %v212_v5   ;;  %v216_v7 = vld [vmem:[%s1224_s0 + $0x38] sm:$0xff]  }
  0x15   : > { %230 = vst [vmem:[#allocation2 + $0x30] sm:$0xff] %v214_v6   ;;  %232 = vst [vmem:[#allocation2 + $0x38] sm:$0xff] %v216_v7  }
  0x16 PF: > { %v1012_v8 = vld [vmem:[%s1091_s24 + $0x38] sm:$0xff]   ;;  %v1013_v9 = vld [vmem:[%s1091_s24 + $0x30] sm:$0xff]   ;;  %v1014_v10 = vld [vmem:[%s1091_s24 + $0x28] sm:$0xff]   ;;  %p824_p5 = scmp.ge.s32.totalorder %s1075_s16, 2 }
  0x17   : > { %940 = vmatprep.subr.bf16.mxu0 %v1012_v8  ;;  %v1015_v11 = vld [vmem:[%s1091_s24 + $0x20] sm:$0xff]   ;;  %v1016_v13 = vld [vmem:[%s1091_s24 + $0x18] sm:$0xff]   ;;  %v1017_v14 = vld [vmem:[%s1091_s24 + $0x10] sm:$0xff]  }
  0x18   : > { %941 = vmatpush3.bf16.msra.mxu0 %v1012_v8  ;;  %v1018_v15 = vld [vmem:[%s1091_s24 + $0x8] sm:$0xff]   ;;  %v1019_v16 = vld [vmem:[%s1091_s24] sm:$0xff]   ;;  %v1030_v50 = vld [vmem:[%s1225_s1 + $0x10] sm:$0xff]  }
  0x19   : > { %942 = vmatprep.subr.bf16.mxu0 %v1013_v9  ;;  %v1020_v12 = vld [vmem:[#allocation2] sm:$0xff]   ;;  %v1021_v17 = vld [vmem:[#allocation2 + $0x8] sm:$0xff]   ;;  %v1031_v51 = vld [vmem:[%s1225_s1 + $0x18] sm:$0xff]  }
  0x1a   : > { %956 = vmatprep.mubr.bf16.mxu0 %v1020_v12  ;;  %v1022_v18 = vld [vmem:[#allocation2 + $0x10] sm:$0xff]   ;;  %v1023_v19 = vld [vmem:[#allocation2 + $0x18] sm:$0xff]   ;;  %v1028_v24 = vld [vmem:[%s1225_s1] sm:$0xff]  }
  0x1b   : > { %v1024_v20 = vld [vmem:[#allocation2 + $0x20] sm:$0xff]   ;;  %v1025_v21 = vld [vmem:[#allocation2 + $0x28] sm:$0xff]   ;;  %988 = vmatprep.mubr.bf16.mxu1 %v1028_v24  ;;  %v1034_v54 = vld [vmem:[%s1225_s1 + $0x30] sm:$0xff]  }
  0x1c   : > { %943 = vmatpush3.bf16.msra.mxu0 %v1013_v9  ;;  %v1026_v22 = vld [vmem:[#allocation2 + $0x30] sm:$0xff]   ;;  %v1027_v23 = vld [vmem:[#allocation2 + $0x38] sm:$0xff]   ;;  %v1029_v49 = vld [vmem:[%s1225_s1 + $0x8] sm:$0xff]  }
  0x1d   : > { %944 = vmatprep.subr.bf16.mxu0 %v1014_v10  ;;  %v1032_v52 = vld [vmem:[%s1225_s1 + $0x20] sm:$0xff]   ;;  %v1033_v53 = vld [vmem:[%s1225_s1 + $0x28] sm:$0xff]   ;;  %v1035_v55 = vld [vmem:[%s1225_s1 + $0x38] sm:$0xff]  }
  0x1e   : > { %v815_v56 = vld [vmem:[%s196_s21] ss:$0 sm:$0xff] }
  0x20   : > { %945 = vmatpush3.bf16.msra.mxu0 %v1014_v10 }
  0x21   : > { %946 = vmatprep.subr.bf16.mxu0 %v1015_v11 }
  0x24   : > { %947 = vmatpush3.bf16.msra.mxu0 %v1015_v11 }
  0x25   : > { %948 = vmatprep.subr.bf16.mxu0 %v1016_v13 }
  0x28   : > { %949 = vmatpush3.bf16.msra.mxu0 %v1016_v13 }
  0x29   : > { %950 = vmatprep.subr.bf16.mxu0 %v1017_v14 }
  0x2c   : > { %951 = vmatpush3.bf16.msra.mxu0 %v1017_v14 }
  0x2d   : > { %952 = vmatprep.subr.bf16.mxu0 %v1018_v15 }
  0x30   : > { %953 = vmatpush3.bf16.msra.mxu0 %v1018_v15 }
  0x31   : > { %954 = vmatprep.subr.bf16.mxu0 %v1019_v16 }
  0x34   : > { %955 = vmatpush3.bf16.msra.mxu0 %v1019_v16 }
  0x37   : > { %957 = vmatmul.mubr.bf16.vlgmr.msra.gmra.mxu0 %v1021_v17 }
  0x38   : > { %960 = vmatprep.mubr.bf16.mxu0 %v1022_v18 }
  0x3f   : > { %961 = vmatmul.mubr.bf16.gmra.mxu0 %v1023_v19 }
  0x40   : > { %964 = vmatprep.mubr.bf16.mxu0 %v1024_v20 }
  0x47   : > { %965 = vmatmul.mubr.bf16.gmra.mxu0 %v1025_v21 }
  0x48   : > { %968 = vmatprep.mubr.bf16.mxu0 %v1026_v22 }
  0x4f   : > { %969 = vmatmul.mubr.bf16.gmra.mxu0 %v1027_v23 }
  0xf7   : > { %v958_v25 = vpop.f32.mrf.mxu0 }
  0xf9   : > { %v396_v26 = vpop.f32.mrf.mxu0 }
  0xfb   : > { %v959_v27 = vpop.f32.mrf.mxu0 }
  0xfc   : > { %v476_v47 = vpack.c.bf16 %v959_v27, %v958_v25 }
  0xfd   : > { %v399_v28 = vpop.f32.mrf.mxu0 }
  0xfe   : > { %v475_v48 = vpack.c.bf16 %v399_v28, %v396_v26 }
  0xff   : > { %v962_v29 = vpop.f32.mrf.mxu0 }
 0x101   : > { %v412_v30 = vpop.f32.mrf.mxu0 }
 0x103   : > { %v963_v31 = vpop.f32.mrf.mxu0 }
 0x104   : > { %v478_v45 = vpack.c.bf16 %v963_v31, %v962_v29 }
 0x105   : > { %v415_v32 = vpop.f32.mrf.mxu0 }
 0x106   : > { %v477_v46 = vpack.c.bf16 %v415_v32, %v412_v30 }
 0x107   : > { %v966_v33 = vpop.f32.mrf.mxu0 }
 0x109   : > { %v428_v34 = vpop.f32.mrf.mxu0 }
 0x10b   : > { %v967_v35 = vpop.f32.mrf.mxu0 }
 0x10c   : > { %v480_v43 = vpack.c.bf16 %v967_v35, %v966_v33 }
 0x10d   : > { %v431_v36 = vpop.f32.mrf.mxu0 }
 0x10e   : > { %v479_v44 = vpack.c.bf16 %v431_v36, %v428_v34 }
 0x10f   : > { %v970_v37 = vpop.f32.mrf.mxu0 }
 0x111   : > { %v444_v38 = vpop.f32.mrf.mxu0 }
 0x113   : > { %v971_v39 = vpop.f32.mrf.mxu0 }
 0x114   : > { %v482_v40 = vpack.c.bf16 %v971_v39, %v970_v37 }
 0x115   : > { %v447_v41 = vpop.f32.mrf.mxu0 }
 0x116   : > { %v481_v42 = vpack.c.bf16 %v447_v41, %v444_v38  ;;  %972 = vmatprep.subr.bf16.mxu1 %v482_v40 }
 0x117   : > { %973 = vmatpush3.bf16.msra.mxu1 %v482_v40 }
 0x118   : > { %974 = vmatprep.subr.bf16.mxu1 %v481_v42 }
 0x11b   : > { %975 = vmatpush3.bf16.msra.mxu1 %v481_v42 }
 0x11c   : > { %976 = vmatprep.subr.bf16.mxu1 %v480_v43 }
 0x11f   : > { %977 = vmatpush3.bf16.msra.mxu1 %v480_v43 }
 0x120   : > { %978 = vmatprep.subr.bf16.mxu1 %v479_v44 }
 0x123   : > { %979 = vmatpush3.bf16.msra.mxu1 %v479_v44 }
 0x124   : > { %980 = vmatprep.subr.bf16.mxu1 %v478_v45 }
 0x127   : > { %981 = vmatpush3.bf16.msra.mxu1 %v478_v45 }
 0x128   : > { %982 = vmatprep.subr.bf16.mxu1 %v477_v46 }
 0x12b   : > { %983 = vmatpush3.bf16.msra.mxu1 %v477_v46 }
 0x12c   : > { %984 = vmatprep.subr.bf16.mxu1 %v476_v47 }
 0x12f   : > { %985 = vmatpush3.bf16.msra.mxu1 %v476_v47 }
 0x130   : > { %986 = vmatprep.subr.bf16.mxu1 %v475_v48 }
 0x133   : > { %987 = vmatpush3.bf16.msra.mxu1 %v475_v48 }
 0x136   : > { %989 = vmatmul.mubr.bf16.vlgmr.msra.gmra.mxu1 %v1029_v49 }
 0x137   : > { %992 = vmatprep.mubr.bf16.mxu1 %v1030_v50 }
 0x13e   : > { %993 = vmatmul.mubr.bf16.gmra.mxu1 %v1031_v51 }
 0x13f   : > { %996 = vmatprep.mubr.bf16.mxu1 %v1032_v52 }
 0x146   : > { %997 = vmatmul.mubr.bf16.gmra.mxu1 %v1033_v53 }
 0x147   : > { %1000 = vmatprep.mubr.bf16.mxu1 %v1034_v54 }
 0x14e   : > { %1001 = vmatmul.mubr.bf16.gmra.mxu1 %v1035_v55 }
 0x1f6   : > { %v990_v57 = vpop.f32.mrf.mxu1 }
 0x1f7   : > { %v1155_v58 = vadd.f32 %v990_v57, %v815_v56 }
 0x1f8   : > { %v572_v59 = vpop.f32.mrf.mxu1 }
 0x1f9   : > { %v1157_v60 = vadd.f32 %v815_v56, %v572_v59 }
 0x1fa   : > { %v991_v61 = vpop.f32.mrf.mxu1 }
 0x1fb   : > { %v1159_v62 = vadd.f32 %v991_v61, %v815_v56 }
 0x1fc   : > { %v575_v63 = vpop.f32.mrf.mxu1 }
 0x1fd   : > { %v576_v0 = vadd.f32 %v815_v56, %v575_v63 }
 0x1fe   : > { %v994_v1 = vpop.f32.mrf.mxu1 }
 0x1ff   : > { %v1161_v2 = vadd.f32 %v994_v1, %v815_v56 }
 0x200   : > { %v588_v3 = vpop.f32.mrf.mxu1 }
 0x201   : > { %v589_v4 = vadd.f32 %v815_v56, %v588_v3 }
 0x202   : > { %v995_v5 = vpop.f32.mrf.mxu1 }
 0x203   : > { %v600_v6 = vadd.f32 %v995_v5, %v815_v56 }
 0x204   : > { %v591_v7 = vpop.f32.mrf.mxu1 }
 0x205   : > { %v592_v8 = vadd.f32 %v815_v56, %v591_v7 }
 0x206   : > { %v998_v9 = vpop.f32.mrf.mxu1 }
 0x207   : > { %v613_v10 = vadd.f32 %v998_v9, %v815_v56 }
 0x208   : > { %v604_v11 = vpop.f32.mrf.mxu1 }
 0x209   : > { %v605_v12 = vadd.f32 %v815_v56, %v604_v11 }
 0x20a   : > { %v999_v13 = vpop.f32.mrf.mxu1 }
 0x20b   : > { %v616_v14 = vadd.f32 %v999_v13, %v815_v56 }
 0x20c   : > { %v607_v15 = vpop.f32.mrf.mxu1 }
 0x20d   : > { %v608_v16 = vadd.f32 %v815_v56, %v607_v15 }
 0x20e   : > { %v1002_v17 = vpop.f32.mrf.mxu1 }
 0x20f   : > { %v629_v18 = vadd.f32 %v1002_v17, %v815_v56 }
 0x210   : > { %v620_v19 = vpop.f32.mrf.mxu1 }
 0x211   : > { %v621_v20 = vadd.f32 %v815_v56, %v620_v19  ;;  %638 = sbr.rel (%p824_p5) target bundleno = 544 (0x220), region = 44 }
 0x212   : > { %v1003_v21 = vpop.f32.mrf.mxu1 }
 0x213   : > { %v632_v22 = vadd.f32 %v1003_v21, %v815_v56 }
 0x214   : > { %v623_v23 = vpop.f32.mrf.mxu1 }
 0x215   : > { %v624_v24 = vadd.f32 %v815_v56, %v623_v23 }
 0x216   : > { %v639_v25 = vmax.f32 %v1157_v60, 0.0  ;;  %v640_v26 = vmax.f32 %v576_v0, 0.0  ;;  %v641_v27 = vmax.f32 %v1155_v58, 0.0  ;;  %v642_v28 = vmax.f32 %v1159_v62, 0.0 }
 0x217   : > { %v643_v29 = vmax.f32 %v589_v4, 0.0  ;;  %v644_v30 = vmax.f32 %v592_v8, 0.0  ;;  %v645_v31 = vmax.f32 %v1161_v2, 0.0  ;;  %v646_v32 = vmax.f32 %v600_v6, 0.0 }
 0x218   : > { %v864_v33 = vpack.c.bf16 %v640_v26, %v639_v25  ;;  %v869_v34 = vpack.c.bf16 %v642_v28, %v641_v27  ;;  %v647_v35 = vmax.f32 %v605_v12, 0.0  ;;  %v648_v36 = vmax.f32 %v608_v16, 0.0 }
 0x219   : > { %v874_v37 = vpack.c.bf16 %v644_v30, %v643_v29  ;;  %v879_v38 = vpack.c.bf16 %v646_v32, %v645_v31  ;;  %v649_v39 = vmax.f32 %v613_v10, 0.0  ;;  %v650_v40 = vmax.f32 %v616_v14, 0.0 }
 0x21a   : > { %865 = vst [vmem:[#allocation2] sm:$0xff] %v864_v33   ;;  %901 = vst [vmem:[#allocation2 + $0x8] sm:$0xff] %v869_v34   ;;  %v884_v41 = vpack.c.bf16 %v648_v36, %v647_v35  ;;  %v651_v42 = vmax.f32 %v621_v20, 0.0  ;;  %v652_v43 = vmax.f32 %v624_v24, 0.0  ;;  %v653_v44 = vmax.f32 %v629_v18, 0.0 }
 0x21b   : > { %902 = vst [vmem:[#allocation2 + $0x10] sm:$0xff] %v874_v37   ;;  %903 = vst [vmem:[#allocation2 + $0x18] sm:$0xff] %v879_v38   ;;  %v889_v45 = vpack.c.bf16 %v650_v40, %v649_v39  ;;  %v654_v46 = vmax.f32 %v632_v22, 0.0 }
 0x21c   : > { %904 = vst [vmem:[#allocation2 + $0x20] sm:$0xff] %v884_v41   ;;  %v894_v47 = vpack.c.bf16 %v652_v43, %v651_v42 }
 0x21d   : > { %905 = vst [vmem:[#allocation2 + $0x28] sm:$0xff] %v889_v45   ;;  %v899_v48 = vpack.c.bf16 %v654_v46, %v653_v44 }
 0x21e   : > { %906 = vst [vmem:[#allocation2 + $0x30] sm:$0xff] %v894_v47  }
 0x21f   : > { %907 = vst [vmem:[#allocation2 + $0x38] sm:$0xff] %v899_v48  }
 0x220 PF: > { %p841_p6 = scmp.ne.s32.totalorder %s1075_s16, 2 }
 0x222   : > { %738 = sbr.rel (%p841_p6) target bundleno = 559 (0x22f), region = 48 }
 0x227   : > { %739 = vst [vmem:[%s1228_s4] sm:$0xff] %v1157_v60  ;;  %740 = vst [vmem:[%s1228_s4 + $0x8] sm:$0xff] %v576_v0 }
 0x228   : > { %741 = vst [vmem:[%s1228_s4 + $0x10] sm:$0xff] %v1155_v58  ;;  %742 = vst [vmem:[%s1228_s4 + $0x18] sm:$0xff] %v1159_v62 }
 0x229   : > { %743 = vst [vmem:[%s1228_s4 + $0x20] sm:$0xff] %v589_v4  ;;  %744 = vst [vmem:[%s1228_s4 + $0x28] sm:$0xff] %v592_v8 }
 0x22a   : > { %745 = vst [vmem:[%s1228_s4 + $0x30] sm:$0xff] %v1161_v2  ;;  %746 = vst [vmem:[%s1228_s4 + $0x38] sm:$0xff] %v600_v6 }
 0x22b   : > { %747 = vst [vmem:[%s1228_s4 + $0x40] sm:$0xff] %v605_v12  ;;  %748 = vst [vmem:[%s1228_s4 + $0x48] sm:$0xff] %v608_v16 }
 0x22c   : > { %749 = vst [vmem:[%s1228_s4 + $0x50] sm:$0xff] %v613_v10  ;;  %750 = vst [vmem:[%s1228_s4 + $0x58] sm:$0xff] %v616_v14 }
 0x22d   : > { %751 = vst [vmem:[%s1228_s4 + $0x60] sm:$0xff] %v621_v20  ;;  %752 = vst [vmem:[%s1228_s4 + $0x68] sm:$0xff] %v624_v24 }
 0x22e   : > { %753 = vst [vmem:[%s1228_s4 + $0x70] sm:$0xff] %v629_v18  ;;  %754 = vst [vmem:[%s1228_s4 + $0x78] sm:$0xff] %v632_v22 }
 0x22f PF: > { %s14_s15 = sadd.s32 1, %s1042_s15  }
 0x230   : > { %p11_p7 = scmp.ge.s32.totalorder %s14_s15, 5  }
 0x232   :  { %13 = sbr.rel (!%p11_p7) target bundleno = 1 (0x1), region = 77 }

</bundles_post_ra>
